<compile_context>
chip_gen: v7x
topology: tpu7x:2x2x1
jax: 0.10.0
libtpu: 0.0.40
codegen_flags: <defaults>
</compile_context>

<pallas_src>
import functools
import math

import jax
import jax.numpy as jnp
from jax.experimental import pallas as pl
from jax.experimental.pallas import tpu as pltpu


def _timestep_embedder_kernel(t_ref, freqs_ref, w1_ref, b1_ref, w2_ref, b2_ref,
                              o_ref, *, fuse_first_dot):
    # t_ref:     (TB, 1)       f32   (block of timesteps)
    # freqs_ref: (1, half)     f32
    # w1_ref:    (2*half, H)   bf16  (row-order: [cos rows ; sin rows])
    # b1_ref:    (1, H)        f32
    # w2_ref:    (H, H)        bf16
    # b2_ref:    (1, H)        f32
    # o_ref:     (TB, H)       bf16
    half = freqs_ref.shape[1]

    t = t_ref[...]                         # (TB, 1) f32
    args = t * freqs_ref[...]              # (TB, half) f32, via broadcast

    # Sinusoids in f32 (EUP); only the matmul operands are cast to bf16.
    cos_e = jnp.cos(args).astype(jnp.bfloat16)     # (TB, half)
    sin_e = jnp.sin(args).astype(jnp.bfloat16)     # (TB, half)

    if fuse_first_dot:
        # v6e/v7x: one K=2*half push through the 256-deep MXU.  The concat is
        # lane-aligned (half is a multiple of 128), so no cross-lane shuffle.
        emb = jnp.concatenate([cos_e, sin_e], axis=-1)        # (TB, 2*half)
        h = jnp.dot(emb, w1_ref[...], preferred_element_type=jnp.float32)
    else:
        # v5e: two native K=128 passes, no concat buffer.
        h = (jnp.dot(cos_e, w1_ref[:half, :],
                     preferred_element_type=jnp.float32)
             + jnp.dot(sin_e, w1_ref[half:, :],
                       preferred_element_type=jnp.float32))
    h = h + b1_ref[...]                                        # (TB, H) f32

    # SiLU via tanh: a single EUP transcendental per vreg.
    h = h * (0.5 * (jnp.tanh(0.5 * h) + 1.0))

    # Second Linear (bf16 operands, f32 accumulate).
    out = (jnp.dot(h.astype(jnp.bfloat16), w2_ref[...],
                   preferred_element_type=jnp.float32)
           + b2_ref[...])                                      # (TB, H) f32

    o_ref[...] = out.astype(o_ref.dtype)


def _is_v5():
    try:
        return "v5" in jax.devices()[0].device_kind.lower()
    except Exception:  # pragma: no cover - defensive
        return False


def _round_up(x, m):
    return ((x + m - 1) // m) * m


def prepare_params(w1, b1, w2, b2, frequency_embedding_size,
                   max_period=10000.0):
    """One-time parameter preparation (hoisted out of the call path).

    w1: (H, 2*half), w2: (H, H) in PyTorch (out, in) layout.
    Returns a dict of kernel-ready arrays (transposed, bf16 weights).
    """
    H = w1.shape[0]
    half = frequency_embedding_size // 2
    # TODO(synk): PyTorch zero-pads when frequency_embedding_size is odd; this
    # kernel assumes it is even (true for the default 256).
    assert frequency_embedding_size % 2 == 0
    assert w1.shape == (H, 2 * half)
    assert w2.shape == (H, H)
    freqs = jnp.exp(
        -math.log(max_period) * jnp.arange(half, dtype=jnp.float32) / half)
    return {
        "w1_t": jnp.asarray(w1).T.astype(jnp.bfloat16),        # (2*half, H)
        "b1": jnp.asarray(b1).reshape(1, H).astype(jnp.float32),
        "w2_t": jnp.asarray(w2).T.astype(jnp.bfloat16),        # (H, H)
        "b2": jnp.asarray(b2).reshape(1, H).astype(jnp.float32),
        "freqs": freqs.reshape(1, half),                        # (1, half) f32
    }


def timestep_embedder(t, params, *, block_b=None, out_dtype=jnp.bfloat16,
                      fuse_first_dot=None):
    """t: (B,) scalar timesteps.  params: output of prepare_params().

    Returns (B, H) embeddings in `out_dtype` (bf16 by default).
    """
    w1_t, b1 = params["w1_t"], params["b1"]
    w2_t, b2 = params["w2_t"], params["b2"]
    freqs = params["freqs"]

    B = t.shape[0]
    half = freqs.shape[1]
    H = w1_t.shape[1]

    v5 = _is_v5()
    if fuse_first_dot is None:
        fuse_first_dot = not v5            # K=256 fusion only on 256-deep MXUs
    if block_b is None:
        block_b = min(128 if v5 else 256, _round_up(B, 8))

    grid_b = pl.cdiv(B, block_b)
    b_pad = grid_b * block_b
    t2d = t.astype(jnp.float32).reshape(B, 1)
    if b_pad != B:
        t2d = jnp.pad(t2d, ((0, b_pad - B), (0, 0)))

    out_bytes = jnp.dtype(out_dtype).itemsize
    cost = pl.CostEstimate(
        flops=2 * b_pad * (2 * half * H + H * H),
        transcendentals=b_pad * (2 * half + H),        # sin + cos + tanh
        bytes_accessed=(w1_t.size * 2 + w2_t.size * 2
                        + (b1.size + b2.size + freqs.size + t2d.size) * 4
                        + b_pad * H * out_bytes),
    )

    kernel = functools.partial(_timestep_embedder_kernel,
                               fuse_first_dot=fuse_first_dot)

    out = pl.pallas_call(
        kernel,
        out_shape=jax.ShapeDtypeStruct((b_pad, H), out_dtype),
        grid=(grid_b,),
        in_specs=[
            pl.BlockSpec((block_b, 1), lambda i: (i, 0)),      # t block
            pl.BlockSpec((1, half), lambda i: (0, 0)),         # freqs (resident)
            pl.BlockSpec((2 * half, H), lambda i: (0, 0)),     # w1 (resident)
            pl.BlockSpec((1, H), lambda i: (0, 0)),            # b1 (resident)
            pl.BlockSpec((H, H), lambda i: (0, 0)),            # w2 (resident)
            pl.BlockSpec((1, H), lambda i: (0, 0)),            # b2 (resident)
        ],
        out_specs=pl.BlockSpec((block_b, H), lambda i: (i, 0)),
        compiler_params=pltpu.CompilerParams(
            dimension_semantics=("parallel",)),
        cost_estimate=cost,
    )(t2d, freqs, w1_t, b1, w2_t, b2)

    return out[:B] if b_pad != B else out


def make_params(key, hidden_size, frequency_embedding_size):
    """Deterministic synthetic parameters (shapes match the PyTorch module)."""
    k1, k2, k3, k4 = jax.random.split(key, 4)
    w1 = jax.random.normal(k1, (hidden_size, frequency_embedding_size),
                           jnp.float32) * 0.02
    b1 = jax.random.normal(k2, (hidden_size,), jnp.float32) * 0.02
    w2 = jax.random.normal(k3, (hidden_size, hidden_size), jnp.float32) * 0.02
    b2 = jax.random.normal(k4, (hidden_size,), jnp.float32) * 0.02
    return w1, b1, w2, b2


def reference_f32(t, freqs, w1, b1, w2, b2):
    """Pure-JAX f32 reference mirroring the PyTorch forward exactly."""
    args = t.astype(jnp.float32)[:, None] * freqs[None, :]
    emb = jnp.concatenate([jnp.cos(args), jnp.sin(args)], axis=-1)
    h = emb @ w1.T + b1
    h = h * jax.nn.sigmoid(h)
    return h @ w2.T + b2


def reference_bf16(t, freqs, w1, b1, w2, b2):
    """Reference mirroring the kernel's bf16 matmul-operand casts."""
    args = t.astype(jnp.float32)[:, None] * freqs[None, :]
    emb = jnp.concatenate([jnp.cos(args), jnp.sin(args)],
                          axis=-1).astype(jnp.bfloat16)
    w1_t = w1.T.astype(jnp.bfloat16)
    w2_t = w2.T.astype(jnp.bfloat16)
    h = jnp.dot(emb, w1_t, preferred_element_type=jnp.float32) + b1
    h = h * jax.nn.sigmoid(h)
    return jnp.dot(h.astype(jnp.bfloat16), w2_t,
                   preferred_element_type=jnp.float32) + b2


if __name__ == "__main__":
    hidden_size = 128
    frequency_embedding_size = 256
    max_period = 10000.0
    B = 8

    key = jax.random.PRNGKey(0)
    kp, kt = jax.random.split(key)
    w1, b1, w2, b2 = make_params(kp, hidden_size, frequency_embedding_size)

    # One-time parameter prep (outside the per-call path).
    params = prepare_params(w1, b1, w2, b2, frequency_embedding_size,
                            max_period=max_period)

    # Scalar timesteps in [0, 1000), like diffusion timesteps.
    t = jax.random.uniform(kt, (B,), jnp.float32, 0.0, 1000.0)

    out = timestep_embedder(t, params)
    out = jax.block_until_ready(out)

    assert out.shape == (B, hidden_size)
    out_f32 = out.astype(jnp.float32)

    half = frequency_embedding_size // 2
    freqs = jnp.exp(
        -math.log(max_period) * jnp.arange(half, dtype=jnp.float32) / half)

    # Check vs a reference that mirrors the kernel's bf16 operand casts
    # (bf16 output adds <~0.5% relative quantization on top).
    ref_bf16 = reference_bf16(t, freqs, w1, b1, w2, b2)
    assert jnp.allclose(out_f32, ref_bf16, atol=3e-3, rtol=1e-2), \
        "mismatch vs bf16-mirror reference"

    # Loose check vs the exact f32 PyTorch-equivalent reference (bf16 weights
    # introduce ~1% relative error).
    ref_f32 = reference_f32(t, freqs, w1, b1, w2, b2)
    assert jnp.allclose(out_f32, ref_f32, atol=2e-2, rtol=5e-2), \
        "mismatch vs f32 reference"

    print("KERNEL_OK")
</pallas_src>

<mosaic_0001>
module attributes {stable_mosaic.version = 11 : i64} {
  func.func @_timestep_embedder_kernel(%arg0: i32, %arg1: memref<8x1xf32, #tpu.memory_space<vmem>>, %arg2: memref<1x128xf32, #tpu.memory_space<vmem>>, %arg3: memref<256x128xbf16, #tpu.memory_space<vmem>>, %arg4: memref<1x128xf32, #tpu.memory_space<vmem>>, %arg5: memref<128x128xbf16, #tpu.memory_space<vmem>>, %arg6: memref<1x128xf32, #tpu.memory_space<vmem>>, %arg7: memref<8x128xbf16, #tpu.memory_space<vmem>>) attributes {dimension_semantics = [#tpu.dimension_semantics<parallel>], iteration_bounds = array<i64: 1>, scalar_prefetch = 0 : i64, scratch_operands = 0 : i64, tpu.core_type = #tpu.core_type<tc>, window_params = [{transform_indices = @transform_0, window_bounds = array<i64: 8, 1>}, {pipeline_mode = #tpu.pipeline_mode<synchronous>, transform_indices = @transform_1, window_bounds = array<i64: 1, 128>}, {pipeline_mode = #tpu.pipeline_mode<synchronous>, transform_indices = @transform_2, window_bounds = array<i64: 256, 128>}, {pipeline_mode = #tpu.pipeline_mode<synchronous>, transform_indices = @transform_3, window_bounds = array<i64: 1, 128>}, {pipeline_mode = #tpu.pipeline_mode<synchronous>, transform_indices = @transform_4, window_bounds = array<i64: 128, 128>}, {pipeline_mode = #tpu.pipeline_mode<synchronous>, transform_indices = @transform_5, window_bounds = array<i64: 1, 128>}, {transform_indices = @transform_6, window_bounds = array<i64: 8, 128>}]} {
    %c0 = arith.constant 0 : index
    %c0_0 = arith.constant 0 : index
    %0 = vector.load %arg1[%c0, %c0_0] : memref<8x1xf32, #tpu.memory_space<vmem>>, vector<8x1xf32>
    %c0_1 = arith.constant 0 : index
    %c0_2 = arith.constant 0 : index
    %1 = vector.load %arg2[%c0_1, %c0_2] : memref<1x128xf32, #tpu.memory_space<vmem>>, vector<1x128xf32>
    %2 = vector.broadcast %0 : vector<8x1xf32> to vector<8x128xf32>
    %3 = vector.broadcast %1 : vector<1x128xf32> to vector<8x128xf32>
    %4 = arith.mulf %2, %3 : vector<8x128xf32>
    %5 = math.cos %4 : vector<8x128xf32>
    %6 = arith.truncf %5 : vector<8x128xf32> to vector<8x128xbf16>
    %7 = math.sin %4 : vector<8x128xf32>
    %8 = arith.truncf %7 : vector<8x128xf32> to vector<8x128xbf16>
    %9 = tpu.concatenate %6, %8 in 1 : vector<8x128xbf16>, vector<8x128xbf16> -> vector<8x256xbf16>
    %c0_3 = arith.constant 0 : index
    %c0_4 = arith.constant 0 : index
    %10 = vector.load %arg3[%c0_3, %c0_4] : memref<256x128xbf16, #tpu.memory_space<vmem>>, vector<256x128xbf16>
    %cst = arith.constant dense<0.000000e+00> : vector<8x128xf32>
    %11 = tpu.matmul %9, %10, %cst {dimension_numbers = #tpu.dot_dimension_numbers<[1], [0], [0], [1], [0, 0, 1, 1], [], []>} : vector<8x256xbf16>, vector<256x128xbf16>, vector<8x128xf32> -> vector<8x128xf32>
    %c0_5 = arith.constant 0 : index
    %c0_6 = arith.constant 0 : index
    %12 = vector.load %arg4[%c0_5, %c0_6] : memref<1x128xf32, #tpu.memory_space<vmem>>, vector<1x128xf32>
    %13 = vector.broadcast %12 : vector<1x128xf32> to vector<8x128xf32>
    %14 = arith.addf %11, %13 : vector<8x128xf32>
    %cst_7 = arith.constant 5.000000e-01 : f32
    %15 = vector.broadcast %cst_7 : f32 to vector<8x128xf32>
    %16 = arith.mulf %15, %14 : vector<8x128xf32>
    %17 = math.tanh %16 : vector<8x128xf32>
    %cst_8 = arith.constant 1.000000e+00 : f32
    %18 = vector.broadcast %cst_8 : f32 to vector<8x128xf32>
    %19 = arith.addf %17, %18 : vector<8x128xf32>
    %cst_9 = arith.constant 5.000000e-01 : f32
    %20 = vector.broadcast %cst_9 : f32 to vector<8x128xf32>
    %21 = arith.mulf %20, %19 : vector<8x128xf32>
    %22 = arith.mulf %14, %21 : vector<8x128xf32>
    %23 = arith.truncf %22 : vector<8x128xf32> to vector<8x128xbf16>
    %c0_10 = arith.constant 0 : index
    %c0_11 = arith.constant 0 : index
    %24 = vector.load %arg5[%c0_10, %c0_11] : memref<128x128xbf16, #tpu.memory_space<vmem>>, vector<128x128xbf16>
    %cst_12 = arith.constant dense<0.000000e+00> : vector<8x128xf32>
    %25 = tpu.matmul %23, %24, %cst_12 {dimension_numbers = #tpu.dot_dimension_numbers<[1], [0], [0], [1], [0, 0, 1, 1], [], []>} : vector<8x128xbf16>, vector<128x128xbf16>, vector<8x128xf32> -> vector<8x128xf32>
    %c0_13 = arith.constant 0 : index
    %c0_14 = arith.constant 0 : index
    %26 = vector.load %arg6[%c0_13, %c0_14] : memref<1x128xf32, #tpu.memory_space<vmem>>, vector<1x128xf32>
    %27 = vector.broadcast %26 : vector<1x128xf32> to vector<8x128xf32>
    %28 = arith.addf %25, %27 : vector<8x128xf32>
    %29 = arith.truncf %28 : vector<8x128xf32> to vector<8x128xbf16>
    %c0_15 = arith.constant 0 : index
    %c0_16 = arith.constant 0 : index
    %30 = vector.load %arg7[%c0_15, %c0_16] : memref<8x128xbf16, #tpu.memory_space<vmem>>, vector<8x128xbf16>
    tpu.vector_store %arg7[%c0_15, %c0_16], %29 {strides = array<i32>} : memref<8x128xbf16, #tpu.memory_space<vmem>>, vector<8x128xbf16>,
    return
  }
  func.func @transform_0(%arg0: i32) -> (i32, i32) {
    %c0_i32 = arith.constant 0 : i32
    %c0_i32_0 = arith.constant 0 : i32
    return %arg0, %c0_i32 : i32, i32
  }
  func.func @transform_1(%arg0: i32) -> (i32, i32) {
    %c0_i32 = arith.constant 0 : i32
    %c0_i32_0 = arith.constant 0 : i32
    %c0_i32_1 = arith.constant 0 : i32
    return %c0_i32, %c0_i32_0 : i32, i32
  }
  func.func @transform_2(%arg0: i32) -> (i32, i32) {
    %c0_i32 = arith.constant 0 : i32
    %c0_i32_0 = arith.constant 0 : i32
    %c0_i32_1 = arith.constant 0 : i32
    return %c0_i32, %c0_i32_0 : i32, i32
  }
  func.func @transform_3(%arg0: i32) -> (i32, i32) {
    %c0_i32 = arith.constant 0 : i32
    %c0_i32_0 = arith.constant 0 : i32
    %c0_i32_1 = arith.constant 0 : i32
    return %c0_i32, %c0_i32_0 : i32, i32
  }
  func.func @transform_4(%arg0: i32) -> (i32, i32) {
    %c0_i32 = arith.constant 0 : i32
    %c0_i32_0 = arith.constant 0 : i32
    %c0_i32_1 = arith.constant 0 : i32
    return %c0_i32, %c0_i32_0 : i32, i32
  }
  func.func @transform_5(%arg0: i32) -> (i32, i32) {
    %c0_i32 = arith.constant 0 : i32
    %c0_i32_0 = arith.constant 0 : i32
    %c0_i32_1 = arith.constant 0 : i32
    return %c0_i32, %c0_i32_0 : i32, i32
  }
  func.func @transform_6(%arg0: i32) -> (i32, i32) {
    %c0_i32 = arith.constant 0 : i32
    %c0_i32_0 = arith.constant 0 : i32
    return %arg0, %c0_i32 : i32, i32
  }
}

</mosaic_0001>

<bundles_post_ra>
// kernel: tpu_custom_call.1
= control target key start
LH: loop header
LB: loop body
LE: loop exit
PB: predicated region body
PF: predicated region fallthrough
CT: control target
= control target key end

     0   :  { %11 = vsyncpa [#allocation3], 0  ;;  %s920_s0 = inlined_call_operand.vmem [shape: f32[8,1], index: 0, kind: input, shape index: {}]   ;;  %s921_s1 = inlined_call_operand.vmem [shape: f32[1,128], index: 1, kind: input, shape index: {}]   ;;  %s922_s2 = inlined_call_operand.hbm [shape: bf16[256,128], index: 2, kind: input, shape index: {}]   ;;  %s923_s3 = inlined_call_operand.vmem [shape: f32[1,128], index: 3, kind: input, shape index: {}]   ;;  %s924_s4 = inlined_call_operand.hbm [shape: bf16[128,128], index: 4, kind: input, shape index: {}]   ;;  %s925_s5 = inlined_call_operand.vmem [shape: f32[1,128], index: 5, kind: input, shape index: {}]   ;;  %s926_s6 = inlined_call_operand.hbm [shape: bf16[8,128], index: 6, kind: output, shape index: {}]  }
   0x1   :  { %12 = vsyncpa [#allocation6], 0 }
   0x2   :  { %13 = vsyncpa [#allocation4], 0  ;;  %s793_s21 = smov [#allocation2]   ;;  %s721_s25 = scalar_lea.hbm %s922_s2, 2048 }
   0x3   :  { %s23_s22 = sshll.u32 %s793_s21, 4  ;;  %p722_p0 = scmp.ne.s32.totalorder %s922_s2, %s721_s25  ;;  %s24_s22 = int_to_ptr.vmem [resolvable:$true] %s23_s22 }
   0x4   :  { %p725_p1 = scmp.lt.u32.totalorder %s721_s25, %s922_s2 }
   0x6   :  { %p727_p2 = pnand %p725_p1, %p722_p0 }
   0x8   :  { %730 = shalt.err (!%p727_p2)
}
   0x9   :  { %s731_s30 = scalar_lea.vmem %s24_s22, 2048  ;;  %p736_p4 = scmp.lt.s32.totalorder %s24_s22, %s24_s22 }
   0xa   :  { %p732_p3 = scmp.ne.s32.totalorder %s24_s22, %s731_s30  ;;  %p737_p5 = scmp.lt.s32.totalorder %s731_s30, %s731_s30 }
   0xc   :  { %p738_p6 = por %p737_p5, %p736_p4 }
   0xe   :  { %p739_p7 = pnand %p738_p6, %p732_p3 }
  0x10   :  { %742 = shalt.err (!%p739_p7)
}
  0x11   :  { %s794_s7 = smov 64   ;;  %s795_s8 = smov 4  }
  0x12   :  { %29 = dma.hbm_to_vmem [thread:$0]  %s922_s2, 2048, %s24_s22, [#allocation3], %s794_s7, %s794_s7, %s795_s8  }
  0x13   :  { %s796_s11 = smov [#allocation5]   ;;  %s743_s15 = scalar_lea.hbm %s924_s4, 1024 }
  0x14   :  { %s37_s12 = sshll.u32 %s796_s11, 4  ;;  %p744_p8 = scmp.ne.s32.totalorder %s924_s4, %s743_s15  ;;  %s38_s12 = int_to_ptr.vmem [resolvable:$true] %s37_s12 }
  0x15   :  { %p747_p9 = scmp.lt.u32.totalorder %s743_s15, %s924_s4 }
  0x17   :  { %p749_p10 = pnand %p747_p9, %p744_p8 }
  0x19   :  { %752 = shalt.err (!%p749_p10)
}
  0x1a   :  { %s753_s20 = scalar_lea.vmem %s38_s12, 1024  ;;  %p758_p12 = scmp.lt.s32.totalorder %s38_s12, %s38_s12 }
  0x1b   :  { %p754_p11 = scmp.ne.s32.totalorder %s38_s12, %s753_s20  ;;  %p759_p13 = scmp.lt.s32.totalorder %s753_s20, %s753_s20 }
  0x1d   :  { %p760_p0 = por %p759_p13, %p758_p12 }
  0x1f   :  { %p761_p1 = pnand %p760_p0, %p754_p11 }
  0x21   :  { %764 = shalt.err (!%p761_p1)
}
  0x22   :  { %43 = dma.hbm_to_vmem [thread:$0]  %s924_s4, 1024, %s38_s12, [#allocation6], %s794_s7, %s794_s7, %s795_s8  }
  0x23   :  { %787 = dma.done.wait [#allocation3], 2048  }
  0x24   :  { %788 = vsyncadd [#allocation3], 4294965248 }
  0x25   :  { %789 = dma.done.wait [#allocation6], 1024  }
  0x26   :  { %790 = vsyncadd [#allocation6], 4294966272  ;;  %v797_v0 = vmov 0   ;;  %v53_v1 = vld [vmem:[%s920_s0] sm:$0xff]  ;;  %v693_v4 = vld [vmem:[#allocation2 + $0x48] sm:$0xff]   ;;  %v798_v19 = vmov 0.0  }
  0x27   :  { %690 = vset.pattern.permute.xlu0 %v797_v0  ;;  %v691_v2 = vld [vmem:[#allocation2 + $0x40] sm:$0xff]   ;;  %v694_v5 = vld [vmem:[#allocation2 + $0x8] sm:$0xff]   ;;  %v695_v6 = vld [vmem:[#allocation2 + $0x50] sm:$0xff]   ;;  %652 = vmatprep.subr.bf16.mxu1 %v798_v19  ;;  %v799_v34 = vmov 2102212464   ;;  %s806_s27 = smov [#allocation7]  }
  0x28   :  { %57 = vperm.xlu0 %690, %v53_v1   ;;  %v692_v3 = vld [vmem:[#allocation2] sm:$0xff]   ;;  %621 = vmatprep.subr.bf16.mxu0 %v691_v2  ;;  %v696_v7 = vld [vmem:[#allocation2 + $0x10] sm:$0xff]   ;;  %v697_v8 = vld [vmem:[#allocation2 + $0x58] sm:$0xff]   ;;  %v800_v36 = vmov 920167782  }
  0x29   :  { %622 = vmatpush3.bf16.msra.mxu0 %v692_v3  ;;  %v698_v9 = vld [vmem:[#allocation2 + $0x18] sm:$0xff]   ;;  %v699_v10 = vld [vmem:[#allocation2 + $0x60] sm:$0xff]   ;;  %v701_v12 = vld [vmem:[#allocation2 + $0x68] sm:$0xff]   ;;  %v801_v40 = vmov 1326507024  }
  0x2a   :  { %623 = vmatprep.subr.bf16.mxu0 %v693_v4  ;;  %v700_v11 = vld [vmem:[#allocation2 + $0x20] sm:$0xff]   ;;  %v702_v13 = vld [vmem:[#allocation2 + $0x28] sm:$0xff]   ;;  %v703_v14 = vld [vmem:[#allocation2 + $0x70] sm:$0xff]   ;;  %v802_v42 = vmov 683565275  }
  0x2b   :  { %v704_v15 = vld [vmem:[#allocation2 + $0x30] sm:$0xff]   ;;  %v705_v16 = vld [vmem:[#allocation2 + $0x78] sm:$0xff]   ;;  %v707_v18 = vld [vmem:[#allocation5] sm:$0xff]   ;;  %v803_v44 = vmov 2475754826  }
  0x2c   :  { %v706_v17 = vld [vmem:[#allocation2 + $0x38] sm:$0xff]   ;;  %653 = vmatpush3.bf16.msra.mxu1 %v707_v18  ;;  %v586_v20 = vld [vmem:[%s921_s1] ss:$0 sm:$0xff]  ;;  %v804_v47 = vmov 2131351028  }
  0x2d   :  { %624 = vmatpush3.bf16.msra.mxu0 %v694_v5  ;;  %654 = vmatprep.subr.bf16.mxu1 %v798_v19 }
  0x2e   :  { %625 = vmatprep.subr.bf16.mxu0 %v695_v6 }
  0x31   :  { %626 = vmatpush3.bf16.msra.mxu0 %v696_v7 }
  0x32   :  { %627 = vmatprep.subr.bf16.mxu0 %v697_v8 }
  0x35   :  { %628 = vmatpush3.bf16.msra.mxu0 %v698_v9 }
  0x36   :  { %629 = vmatprep.subr.bf16.mxu0 %v699_v10 }
  0x39   :  { %630 = vmatpush3.bf16.msra.mxu0 %v700_v11 }
  0x3a   :  { %631 = vmatprep.subr.bf16.mxu0 %v701_v12 }
  0x3d   :  { %632 = vmatpush3.bf16.msra.mxu0 %v702_v13 }
  0x3e   :  { %633 = vmatprep.subr.bf16.mxu0 %v703_v14 }
  0x41   :  { %634 = vmatpush3.bf16.msra.mxu0 %v704_v15 }
  0x42   :  { %635 = vmatprep.subr.bf16.mxu0 %v705_v16 }
  0x45   :  { %636 = vmatpush3.bf16.msra.mxu0 %v706_v17 }
  0xa7   :  { %v58_v21 = vpop.permute.xlu0 %57 }
  0xa8   :  { %v874_v22 = vmul.f32 %v586_v20, %v58_v21 }
  0xaa   :  { %v70_v23 = vand.u32 2139095040, %v874_v22  ;;  %v67_v24 = vand.u32 2147483647, %v874_v22  ;;  %vm69_vm7 = vcmp.lt.s32.totalorder %v874_v22, 0  ;;  %vm159_vm15 = vweird.f32 %v874_v22 }
  0xac   :  { %v71_v25 = vshrl.u32 %v70_v23, 23  ;;  %v74_v27 = vand.u32 8388607, %v67_v24  ;;  %vm68_vm8 = vcmp.le.f32.partialorder %v67_v24, 0.7853982 }
  0xae   :  { %v587_v26 = vadd.s32 4294967169, %v71_v25  ;;  %v75_v30 = vor.u32 8388608, %v74_v27 }
  0xb0   :  { %v77_v28 = vadd.s32 1, %v587_v26  ;;  %v115_v38 = vshll.u32 %v75_v30, 8 }
  0xb2   :  { %vm78_vm0 = vcmp.gt.s32.totalorder %v77_v28, 0 }
  0xb3   :  { %v79_v29 = vsel %vm78_vm0, %v77_v28, 0  ;;  %vm805_vm0 = vmmov 0  }
  0xb4   :  { %v81_v31 = vand.u32 31, %v79_v29  ;;  %v80_v32 = vshrl.u32 %v79_v29, 5  ;;  %668 = vmatprep.mubr.msk.bf16.mxu1 %vm805_vm0, %v798_v19 }
  0xb6   :  { %v82_v33 = vsub.s32 32, %v81_v31  ;;  %v93_v35 = vshll.u32 %v799_v34, %v81_v31  ;;  %v96_v37 = vshll.u32 %v800_v36, %v81_v31  ;;  %v84_v43 = vshll.u32 %v802_v42, %v81_v31 }
  0xb7   :  { %v87_v46 = vshll.u32 %v803_v44, %v81_v31  ;;  %v90_v49 = vshll.u32 %v804_v47, %v81_v31  ;;  %vm102_vm1 = vcmp.lt.s32.totalorder %v80_v32, 4  ;;  %vm99_vm2 = vcmp.lt.s32.totalorder %v80_v32, 1 }
  0xb8   :  { %v94_v39 = vshrl.u32 %v800_v36, %v82_v33  ;;  %v97_v41 = vshrl.u32 %v801_v40, %v82_v33  ;;  %v85_v45 = vshrl.u32 %v803_v44, %v82_v33  ;;  %v88_v48 = vshrl.u32 %v804_v47, %v82_v33 }
  0xb9   :  { %v91_v50 = vshrl.u32 %v799_v34, %v82_v33  ;;  %v83_v54 = vshrl.u32 %v802_v42, %v82_v33  ;;  %vm100_vm3 = vcmp.lt.s32.totalorder %v80_v32, 2  ;;  %vm101_vm4 = vcmp.lt.s32.totalorder %v80_v32, 3 }
  0xba   :  { %v95_v51 = vor.u32 %v94_v39, %v93_v35  ;;  %v98_v52 = vor.u32 %v97_v41, %v96_v37  ;;  %v86_v53 = vor.u32 %v85_v45, %v84_v43  ;;  %v89_v55 = vor.u32 %v88_v48, %v87_v46 }
  0xbb   :  { %v92_v56 = vor.u32 %v91_v50, %v90_v49 }
  0xbc   :  { %v108_v57 = vsel %vm102_vm1, %v95_v51, 920167782  ;;  %v112_v58 = vsel %vm102_vm1, %v98_v52, 1326507024  ;;  %v107_v60 = vsel %vm99_vm2, %v86_v53, %v89_v55  ;;  %v103_v63 = vsel %vm99_vm2, %v83_v54, %v86_v53 }
  0xbd   :  { %v104_v59 = vsel %vm102_vm1, %v92_v56, 2102212464  ;;  %v109_v61 = vsel %vm101_vm4, %v92_v56, %v108_v57  ;;  %v111_v62 = vsel %vm99_vm2, %v89_v55, %v92_v56  ;;  %v113_v2 = vsel %vm101_vm4, %v95_v51, %v112_v58 }
  0xbe   :  { %v105_v0 = vsel %vm101_vm4, %v89_v55, %v104_v59  ;;  %v110_v1 = vsel %vm100_vm3, %v107_v60, %v109_v61  ;;  %v114_v3 = vsel %vm100_vm3, %v111_v62, %v113_v2  ;;  %v708_v59 = vld [vmem:[#allocation5 + $0x8] sm:$0xff]   ;;  %v709_v60 = vld [vmem:[#allocation5 + $0x10] sm:$0xff]   ;;  %v710_v61 = vld [vmem:[#allocation5 + $0x18] sm:$0xff]  }
  0xbf   :  { %v880_v4 = vmul.u32.u64.low %v115_v38, %v110_v1  ;;  %v881_v5 = vmul.u32.u64.high %v115_v38, %v110_v1, %v880_v4  ;;  %v883_v6 = vmul.u32.u64.low %v115_v38, %v114_v3  ;;  %v884_v7 = vmul.u32.u64.high %v115_v38, %v114_v3, %v883_v6  ;;  %655 = vmatpush3.bf16.msra.mxu1 %v708_v59  ;;  %v712_v62 = vld [vmem:[#allocation5 + $0x28] sm:$0xff]   ;;  %v595_v2 = vld [vmem:[%s923_s3] ss:$0 sm:$0xff]  ;;  %s576_s3 = sshll.u32 %s806_s27, 4  ;;  %s577_s3 = int_to_ptr.vmem [resolvable:$true] %s576_s3 }
  0xc0   :  { %v106_v8 = vsel %vm100_vm3, %v103_v63, %v105_v0  ;;  %656 = vmatprep.subr.bf16.mxu1 %v798_v19  ;;  %v713_v63 = vld [vmem:[#allocation5 + $0x30] sm:$0xff]   ;;  %v714_v0 = vld [vmem:[#allocation5 + $0x38] sm:$0xff]   ;;  %s765_s28 = scalar_lea.vmem %s577_s3, 64  ;;  %p770_p3 = scmp.lt.s32.totalorder %s577_s3, %s577_s3 }
  0xc1   :  { %v125_v9 = vadd.s32 1, %v881_v5  ;;  %v122_v10 = vmul.u32 %v115_v38, %v106_v8  ;;  %vm124_vm5 = vc.u32 %v884_v7, %v880_v4  ;;  %v123_v25 = vadd.s32 %v880_v4, %v884_v7  ;;  %p766_p2 = scmp.ne.s32.totalorder %s577_s3, %s765_s28  ;;  %p771_p4 = scmp.lt.s32.totalorder %s765_s28, %s765_s28 }
  0xc3   :  { %v126_v11 = vsel %vm124_vm5, %v125_v9, %v881_v5  ;;  %657 = vmatpush3.bf16.msra.mxu1 %v709_v60  ;;  %p772_p5 = por %p771_p4, %p770_p3 }
  0xc4   :  { %v127_v12 = vadd.s32 %v126_v11, %v122_v10  ;;  %658 = vmatprep.subr.bf16.mxu1 %v798_v19 }
  0xc5   :  { %p773_p6 = pnand %p772_p5, %p766_p2 }
  0xc6   :  { %v128_v13 = vadd.s32 536870912, %v127_v12 }
  0xc7   :  { %659 = vmatpush3.bf16.msra.mxu1 %v710_v61 }
  0xc8   :  { %v129_v14 = vshrl.u32 %v128_v13, 30  ;;  %660 = vmatprep.subr.bf16.mxu1 %v798_v19 }
  0xca   :  { %v130_v15 = vshll.u32 %v129_v14, 30  ;;  %v153_v37 = vsub.s32 4, %v129_v14 }
  0xcc   :  { %v131_v16 = vsub.s32 %v127_v12, %v130_v15  ;;  %v154_v40 = vsel %vm69_vm7, %v153_v37, %v129_v14 }
  0xcd   :  { %v156_v42 = vsel %vm68_vm8, 0, %v154_v40 }
  0xce   :  { %v133_v17 = vsub.s32 0, %v131_v16  ;;  %v264_v43 = vadd.s32 3, %v156_v42  ;;  %v160_v44 = vand.u32 3, %v156_v42 }
  0xd0   :  { %v588_v18 = vmin.u32 %v133_v17, %v131_v16  ;;  %v265_v45 = vand.u32 3, %v264_v43  ;;  %vm165_vm9 = vcmp.eq.s32.totalorder %v160_v44, 2  ;;  %vm162_vm11 = vcmp.eq.s32.totalorder %v160_v44, 0 }
  0xd1   :  { %vm161_vm13 = vcmp.lt.s32.totalorder %v160_v44, 2 }
  0xd2   :  { %v135_v20 = vclz %v588_v18  ;;  %vm270_vm10 = vcmp.eq.s32.totalorder %v265_v45, 2  ;;  %vm267_vm12 = vcmp.eq.s32.totalorder %v265_v45, 0  ;;  %vm266_vm14 = vcmp.lt.s32.totalorder %v265_v45, 2 }
  0xd4   :  { %v589_v21 = vadd.s32 4294967294, %v135_v20 }
  0xd6   :  { %vm590_vm6 = vcmp.lt.s32.totalorder %v589_v21, 0 }
  0xd7   :  { %v138_v23 = vsel %vm590_vm6, 0, %v589_v21 }
  0xd8   :  { %v139_v26 = vsub.s32 32, %v138_v23  ;;  %v143_v27 = vsub.s32 4294967266, %v138_v23  ;;  %v140_v28 = vshll.u32 %v131_v16, %v138_v23 }
  0xda   :  { %v141_v29 = vshrl.u32 %v123_v25, %v139_v26  ;;  %v144_v30 = vadd.s32 127, %v143_v27 }
  0xdc   :  { %v142_v31 = vor.u32 %v141_v29, %v140_v28  ;;  %v145_v32 = vshll.u32 %v144_v30, 23 }
  0xde   :  { %v146_v33 = vor.u32 4788187, %v145_v32  ;;  %v149_v35 = vcvt.s32.f32 %v142_v31 }
  0xe0   :  { %v147_v34 = vand.u32 2147483647, %v146_v33 }
  0xe2   :  { %v150_v36 = vmul.f32 %v149_v35, %v147_v34 }
  0xe4   :  { %v151_v38 = vxor.u32 2147483648, %v150_v36 }
  0xe6   :  { %v152_v39 = vsel %vm69_vm7, %v151_v38, %v150_v36 }
  0xe7   :  { %v155_v41 = vsel %vm68_vm8, %v874_v22, %v152_v39  ;;  %v711_v22 = vld [vmem:[#allocation5 + $0x20] sm:$0xff]  }
  0xe8   :  { %715 = vcosq.f32 %v155_v41  ;;  %661 = vmatpush3.bf16.msra.mxu1 %v711_v22 }
  0xe9   :  { %717 = vsinq.f32 %v155_v41  ;;  %662 = vmatprep.subr.bf16.mxu1 %v798_v19 }
  0xec   :  { %663 = vmatpush3.bf16.msra.mxu1 %v712_v62 }
  0xed   :  { %664 = vmatprep.subr.bf16.mxu1 %v798_v19 }
  0xf0   :  { %665 = vmatpush3.bf16.msra.mxu1 %v713_v63 }
  0xf1   :  { %666 = vmatprep.subr.bf16.mxu1 %v798_v19  ;;  %v612_v19 = vld [vmem:[%s925_s5] ss:$0 sm:$0xff] }
  0xf2   :  { %v716_v46 = vpop.eup %715 }
  0xf3   :  { %v718_v47 = vpop.eup %717  ;;  %v166_v48 = vxor.u32 2147483648, %v716_v46 }
  0xf4   :  { %v163_v49 = vxor.u32 2147483648, %v718_v47  ;;  %667 = vmatpush3.bf16.msra.mxu1 %v714_v0 }
  0xf5   :  { %v167_v50 = vsel %vm165_vm9, %v166_v48, %v718_v47  ;;  %v272_v24 = vsel %vm270_vm10, %v166_v48, %v718_v47 }
  0xf6   :  { %v164_v51 = vsel %vm162_vm11, %v716_v46, %v163_v49  ;;  %v269_v52 = vsel %vm267_vm12, %v716_v46, %v163_v49 }
  0xf7   :  { %v168_v53 = vsel %vm161_vm13, %v164_v51, %v167_v50  ;;  %v273_v54 = vsel %vm266_vm14, %v269_v52, %v272_v24 }
  0xf8   :  { %v169_v55 = vsel %vm159_vm15, nan, %v168_v53  ;;  %v274_v56 = vsel %vm159_vm15, nan, %v273_v54 }
  0xf9   :  { %v170_v57 = vpack.c.bf16 %v169_v55, %v169_v55  ;;  %v275_v58 = vpack.c.bf16 %v274_v56, %v274_v56 }
  0xfb   :  { %443 = vmatprep.mubr.bf16.mxu0 %v275_v58 }
  0xfc   :  { %444 = vmatmul.mubr.bf16.vlgmr.msra.gmra.mrb[0].mxu0 %v170_v57 }
 0x1cf   :  { %v637_v1 = vpop.f32.mrb[0].mxu0 }
 0x1d0   :  { %v638_v3 = vpop.f32.mrb[1].mxu0 }
 0x1d1   :  { %v639_v4 = vadd.f32 %v638_v3, %v637_v1  ;;  %v640_v5 = vpop.f32.mrb[2].mxu0 }
 0x1d2   :  { %v641_v6 = vpop.f32.mrb[3].mxu0 }
 0x1d3   :  { %v446_v7 = vadd.f32 %v639_v4, %v595_v2 }
 0x1d5   :  { %v451_v8 = vmul.f32 0.5, %v446_v7 }
 0x1d7   :  { %719 = vtanh.f32 %v451_v8 }
 0x1e1   :  { %v720_v9 = vpop.eup %719 }
 0x1e2   :  { %v453_v10 = vadd.f32 1.0, %v720_v9 }
 0x1e4   :  { %v454_v11 = vmul.f32 0.5, %v453_v10 }
 0x1e6   :  { %v455_v12 = vmul.f32 %v454_v11, %v446_v7 }
 0x1e8   :  { %v456_v13 = vpack.c.bf16 %v455_v12, %v455_v12 }
 0x1ea   :  { %669 = vmatmul.mubr.bf16.vlgmr.msra.gmra.mrb[0].mxu1 %v456_v13 }
 0x2bd   :  { %v562_v14 = vpop.f32.mrb[0].mxu1 }
 0x2be   :  { %v563_v15 = vadd.f32 %v612_v19, %v562_v14  ;;  %v670_v16 = vpop.f32.mrb[1].mxu1 }
 0x2bf   :  { %v565_v17 = vpop.f32.mrb[2].mxu1 }
 0x2c0   :  { %v568_v18 = vpack.c.bf16 %v563_v15, %v563_v15  ;;  %v671_v20 = vpop.f32.mrb[3].mxu1 }
 0x2c2   :  { %569 = vst [vmem:[#allocation7] sm:$0xf] %v568_v18 }
 0x2c3   :  { %776 = shalt.err (!%p773_p6)
}
 0x2c4   :  { %s777_s5 = scalar_lea.hbm %s926_s6, 64 }
 0x2c5   :  { %p778_p7 = scmp.ne.s32.totalorder %s926_s6, %s777_s5  ;;  %p781_p8 = scmp.lt.u32.totalorder %s777_s5, %s926_s6 }
 0x2c7   :  { %p783_p9 = pnand %p781_p8, %p778_p7 }
 0x2c9   :  { %786 = shalt.err (!%p783_p9)
}
 0x2ca   :  { %579 = dma.vmem_to_hbm [thread:$0]  %s577_s3, 64, %s926_s6, [#allocation4]  }
 0x2cb   :  { %791 = dma.done.wait [#allocation4], 64  }
 0x2cc   :  { %792 = vsyncadd [#allocation4], 4294967232 }
 0x2cd   :  { %583 = vsyncpa [#allocation3], 1 }
 0x2ce   :  { %584 = vsyncpa [#allocation6], 1 }
 0x2cf   :  { %585 = vsyncpa [#allocation4], 1 }

</bundles_post_ra>
